<compile_context>
chip_gen: v5e
topology: v5e:2x2
jax: 0.10.0
libtpu: 0.0.40
codegen_flags: <defaults>
</compile_context>

<pallas_src>
import math
from functools import partial

import jax
import jax.numpy as jnp
from jax.experimental import pallas as pl
from jax.experimental.pallas import tpu as pltpu


def _round_up(x, m):
    return ((x + m - 1) // m) * m


def _pick_tile(padded, cap):
    """Largest multiple of 128 that is <= cap and divides `padded` (which is a
    multiple of 128). Falls back to 128."""
    best = 128
    t = 128
    while t <= cap:
        if padded % t == 0:
            best = t
        t += 128
    return best


# ----------------------------------------------------------------------------
# Kernel: out = sigmoid(x @ w), K-tiled with an f32 accumulator scratch.
#   x_ref: (tm, tk) bf16   w_ref: (tk, tn) bf16   o_ref: (tm, tn) f32
# ----------------------------------------------------------------------------
def _sigmoid_matmul_kernel(x_ref, w_ref, o_ref, acc_ref):
    k = pl.program_id(2)

    @pl.when(k == 0)
    def _():
        acc_ref[...] = jnp.zeros_like(acc_ref)

    acc_ref[...] += jnp.dot(
        x_ref[...], w_ref[...], preferred_element_type=jnp.float32
    )

    @pl.when(k == pl.num_programs(2) - 1)
    def _():
        z = acc_ref[...]
        # sigmoid(z) = 1 / (1 + exp(-z)); exp + approx reciprocal both go to
        # the EUP slot, keeping VALU/store slots free in the epilogue.
        o_ref[...] = pl.reciprocal(1.0 + jnp.exp(-z), approx=True).astype(o_ref.dtype)


# ----------------------------------------------------------------------------
# One-time weight preparation (hoisted out of the per-call forward).
# ----------------------------------------------------------------------------
def prepare_weight(weight):
    """weight: (out_features, in_features) = (H*L, pseudos), PyTorch layout.

    Returns the pre-transposed, lane-padded, bf16 weight of shape (Kp, Np)."""
    n_out, k_in = weight.shape
    kp = _round_up(k_in, 128)
    np_ = _round_up(n_out, 128)
    w_prepped = jnp.pad(weight.T, ((0, kp - k_in), (0, np_ - n_out))).astype(
        jnp.bfloat16
    )
    return w_prepped


# ----------------------------------------------------------------------------
# Forward: sigmoid(x @ weight.T) using the prepped weight.
# ----------------------------------------------------------------------------
@partial(jax.jit, static_argnums=2)
def pseudo_gen_forward(w_prepped, x, out_features):
    """w_prepped: (Kp, Np) bf16 from prepare_weight
    x:         (batch, pseudos) float
    returns    (batch, out_features) float32 = sigmoid(x @ W.T)
    """
    M, K = x.shape
    Kp, Np = w_prepped.shape
    assert K <= Kp and out_features <= Np

    # Tile selection (divisor-aware on the padded lane axes).
    tk = _pick_tile(Kp, 512)
    tn = _pick_tile(Np, 512)
    tm = min(256, _round_up(M, 16))          # bf16 packs 16 rows per sublane tile
    Mp = _round_up(M, tm)

    # Guarantee >= 2 parallel tiles where possible (v7x: 2 TensorCores).
    if (Mp // tm) * (Np // tn) < 2 and Np >= 256:
        tn = _pick_tile(Np, Np // 2)

    nm, nn, nk = Mp // tm, Np // tn, Kp // tk

    # x is the only per-call prep (it changes every call); pad + cast to bf16.
    x_p = jnp.pad(x, ((0, Mp - M), (0, Kp - K))).astype(jnp.bfloat16)

    # Shape-derived VMEM limit (double-buffered bf16 inputs + f32 output + acc).
    in_bytes = 2 * (tm * tk + tk * tn) * 2
    out_bytes = 2 * tm * tn * 4
    acc_bytes = tm * tn * 4
    vmem_limit = min(
        40 * 1024 * 1024,
        max(8 * 1024 * 1024, in_bytes + out_bytes + acc_bytes + 2 * 1024 * 1024),
    )

    # Residency by operand size: keep the larger operand's block constant along
    # the inner parallel axis so it is not re-DMA'd each step.
    weight_resident = (Kp * Np) >= (Mp * Kp)
    if weight_resident:
        # grid = (N tiles, M tiles, K tiles): weight block (k, j) is constant
        # over the inner M axis; x is streamed.
        grid = (nn, nm, nk)
        x_spec = pl.BlockSpec((tm, tk), lambda j, i, k: (i, k))
        w_spec = pl.BlockSpec((tk, tn), lambda j, i, k: (k, j))
        o_spec = pl.BlockSpec((tm, tn), lambda j, i, k: (i, j))
    else:
        # grid = (M tiles, N tiles, K tiles): x block resident over inner N.
        grid = (nm, nn, nk)
        x_spec = pl.BlockSpec((tm, tk), lambda i, j, k: (i, k))
        w_spec = pl.BlockSpec((tk, tn), lambda i, j, k: (k, j))
        o_spec = pl.BlockSpec((tm, tn), lambda i, j, k: (i, j))

    out = pl.pallas_call(
        _sigmoid_matmul_kernel,
        out_shape=jax.ShapeDtypeStruct((Mp, Np), jnp.float32),
        grid=grid,
        in_specs=[x_spec, w_spec],
        out_specs=o_spec,
        scratch_shapes=[pltpu.VMEM((tm, tn), jnp.float32)],
        compiler_params=pltpu.CompilerParams(
            dimension_semantics=("parallel", "parallel", "arbitrary"),
            vmem_limit_bytes=vmem_limit,
        ),
    )(x_p, w_prepped)

    if Mp == M and Np == out_features:
        return out
    return out[:M, :out_features]


def init_params(key, input_height, input_length, pseudos):
    """nn.Linear(pseudos, H*L, bias=False) weight, PyTorch default init."""
    bound = 1.0 / math.sqrt(pseudos)
    weight = jax.random.uniform(
        key,
        (input_height * input_length, pseudos),
        jnp.float32,
        minval=-bound,
        maxval=bound,
    )
    return {"means_w": weight}


if __name__ == "__main__":
    # Small shapes consistent with the module.
    input_height, input_length, pseudos = 16, 16, 8

    key = jax.random.PRNGKey(0)
    params = init_params(key, input_height, input_length, pseudos)
    out_features = input_height * input_length

    # One-time (hoisted) weight preparation.
    w_prepped = prepare_weight(params["means_w"])

    # The module's idle_input buffer (identity over pseudo-inputs) is the
    # natural deterministic forward input: x = eye(pseudos, pseudos).
    idle_input = jnp.eye(pseudos, dtype=jnp.float32)

    out = pseudo_gen_forward(w_prepped, idle_input, out_features)
    jax.block_until_ready(out)

    # Reference check (bf16 operands + approx reciprocal -> loose tolerance).
    ref = 1.0 / (1.0 + jnp.exp(-(idle_input @ params["means_w"].T)))
    assert out.shape == (pseudos, out_features)
    assert bool(jnp.all(jnp.isfinite(out)))
    assert bool(jnp.allclose(out, ref, atol=5e-2, rtol=5e-2))
    print("KERNEL_OK")
</pallas_src>

<mosaic_0001>
module attributes {stable_mosaic.version = 11 : i64} {
  func.func @_sigmoid_matmul_kernel(%arg0: i32, %arg1: i32, %arg2: i32, %arg3: memref<16x128xbf16, #tpu.memory_space<vmem>>, %arg4: memref<128x128xbf16, #tpu.memory_space<vmem>>, %arg5: memref<16x128xf32, #tpu.memory_space<vmem>>, %arg6: memref<16x128xf32, #tpu.memory_space<vmem>>) attributes {dimension_semantics = [#tpu.dimension_semantics<parallel>, #tpu.dimension_semantics<parallel>, #tpu.dimension_semantics<arbitrary>], iteration_bounds = array<i64: 2, 1, 1>, scalar_prefetch = 0 : i64, scratch_operands = 1 : i64, tpu.core_type = #tpu.core_type<tc>, window_params = [{transform_indices = @transform_0, window_bounds = array<i64: 16, 128>}, {transform_indices = @transform_1, window_bounds = array<i64: 128, 128>}, {transform_indices = @transform_2, window_bounds = array<i64: 16, 128>}]} {
    %c0_i32 = arith.constant 0 : i32
    %0 = arith.cmpi eq, %arg2, %c0_i32 : i32
    %1 = arith.extui %0 : i1 to i32
    %c0_i32_0 = arith.constant 0 : i32
    %2 = arith.cmpi ne, %1, %c0_i32_0 : i32
    scf.if %2 {
      %cst_10 = arith.constant 0.000000e+00 : f32
      %12 = vector.broadcast %cst_10 : f32 to vector<16x128xf32>
      %c0_11 = arith.constant 0 : index
      %c0_12 = arith.constant 0 : index
      %13 = vector.load %arg6[%c0_11, %c0_12] : memref<16x128xf32, #tpu.memory_space<vmem>>, vector<16x128xf32>
      tpu.vector_store %arg6[%c0_11, %c0_12], %12 {strides = array<i32>} : memref<16x128xf32, #tpu.memory_space<vmem>>, vector<16x128xf32>,
    } else {
    }
    %c0 = arith.constant 0 : index
    %c0_1 = arith.constant 0 : index
    %3 = vector.load %arg6[%c0, %c0_1] : memref<16x128xf32, #tpu.memory_space<vmem>>, vector<16x128xf32>
    %c0_2 = arith.constant 0 : index
    %c0_3 = arith.constant 0 : index
    %4 = vector.load %arg3[%c0_2, %c0_3] : memref<16x128xbf16, #tpu.memory_space<vmem>>, vector<16x128xbf16>
    %c0_4 = arith.constant 0 : index
    %c0_5 = arith.constant 0 : index
    %5 = vector.load %arg4[%c0_4, %c0_5] : memref<128x128xbf16, #tpu.memory_space<vmem>>, vector<128x128xbf16>
    %cst = arith.constant dense<0.000000e+00> : vector<16x128xf32>
    %6 = tpu.matmul %4, %5, %cst {dimension_numbers = #tpu.dot_dimension_numbers<[1], [0], [0], [1], [0, 0, 1, 1], [], []>} : vector<16x128xbf16>, vector<128x128xbf16>, vector<16x128xf32> -> vector<16x128xf32>
    %7 = arith.addf %3, %6 : vector<16x128xf32>
    %c0_6 = arith.constant 0 : index
    %c0_7 = arith.constant 0 : index
    %8 = vector.load %arg6[%c0_6, %c0_7] : memref<16x128xf32, #tpu.memory_space<vmem>>, vector<16x128xf32>
    tpu.vector_store %arg6[%c0_6, %c0_7], %7 {strides = array<i32>} : memref<16x128xf32, #tpu.memory_space<vmem>>, vector<16x128xf32>,
    %c0_i32_8 = arith.constant 0 : i32
    %9 = arith.cmpi eq, %arg2, %c0_i32_8 : i32
    %10 = arith.extui %9 : i1 to i32
    %c0_i32_9 = arith.constant 0 : i32
    %11 = arith.cmpi ne, %10, %c0_i32_9 : i32
    scf.if %11 {
      %c0_10 = arith.constant 0 : index
      %c0_11 = arith.constant 0 : index
      %12 = vector.load %arg6[%c0_10, %c0_11] : memref<16x128xf32, #tpu.memory_space<vmem>>, vector<16x128xf32>
      %cst_12 = arith.constant 0.000000e+00 : f32
      %13 = vector.broadcast %cst_12 : f32 to vector<16x128xf32>
      %14 = arith.subf %13, %12 : vector<16x128xf32>
      %15 = math.exp %14 : vector<16x128xf32>
      %cst_13 = arith.constant 1.000000e+00 : f32
      %16 = vector.broadcast %cst_13 : f32 to vector<16x128xf32>
      %17 = arith.addf %16, %15 : vector<16x128xf32>
      %18 = tpu.reciprocal %17 {approx = true} : vector<16x128xf32> -> vector<16x128xf32>
      %c0_14 = arith.constant 0 : index
      %c0_15 = arith.constant 0 : index
      %19 = vector.load %arg5[%c0_14, %c0_15] : memref<16x128xf32, #tpu.memory_space<vmem>>, vector<16x128xf32>
      tpu.vector_store %arg5[%c0_14, %c0_15], %18 {strides = array<i32>} : memref<16x128xf32, #tpu.memory_space<vmem>>, vector<16x128xf32>,
    } else {
    }
    return
  }
  func.func @transform_0(%arg0: i32, %arg1: i32, %arg2: i32) -> (i32, i32) {
    %c0_i32 = arith.constant 0 : i32
    return %arg1, %arg2 : i32, i32
  }
  func.func @transform_1(%arg0: i32, %arg1: i32, %arg2: i32) -> (i32, i32) {
    %c0_i32 = arith.constant 0 : i32
    return %arg2, %arg0 : i32, i32
  }
  func.func @transform_2(%arg0: i32, %arg1: i32, %arg2: i32) -> (i32, i32) {
    %c0_i32 = arith.constant 0 : i32
    return %arg1, %arg0 : i32, i32
  }
}

</mosaic_0001>

<bundles_post_ra>
// kernel: pseudo_gen_forward.1
= control target key start
LH: loop header
LB: loop body
LE: loop exit
PB: predicated region body
PF: predicated region fallthrough
CT: control target
= control target key end

     0   :  { %7 = vsyncpa [#allocation4], 0  ;;  %s805_s0 = inlined_call_operand.vmem [shape: bf16[16,128], index: 0, kind: input, shape index: {}]   ;;  %s806_s1 = inlined_call_operand.hbm [shape: bf16[128,256], index: 1, kind: input, shape index: {}]   ;;  %s807_s2 = inlined_call_operand.vmem [shape: f32[16,256], index: 2, kind: output, shape index: {}]  }
   0x1   :  { %9 = vsyncpa [#allocation4 + $0x1], 0  ;;  %s704_s9 = smov 0   ;;  %s706_s10 = smov 0  }
   0x2   :  { %s708_s11 = smov 0   ;;  %s710_s12 = smov 0  }
   0x3   :  { %s712_s13 = smov 0   ;;  %s714_s14 = smov 0  }
   0x4 LB: > { %s479_s15 = sadd.s32 4294967295, %s684_s14   ;;  %s34_s16 = sadd.s32 1, %s680_s13  ;;  %s684_s14 = sphi %s714_s14, %s15_s14   ;;  %s680_s13 = sphi %s712_s13, %s815_s13   ;;  %s676_s12 = sphi %s710_s12, %s814_s12   ;;  %s672_s11 = sphi %s708_s11, %s813_s11   ;;  %s668_s10 = sphi %s706_s10, %s812_s10   ;;  %s664_s9 = sphi %s704_s9, %s811_s9  }
   0x5   : > { %p36_p0 = scmp.ge.s32.totalorder %s34_s16, 2  ;;  %s71_s17 = sadd.s32 1, %s672_s11 }
   0x6   : > { %p78_p1 = scmp.ne.s32.totalorder %s672_s11, %s668_s10  ;;  %p79_p2 = scmp.eq.s32.totalorder %s684_s14, 0 }
   0x7   : > { %s817_s16 = smov (%p36_p0, %s34_s16), 0  ;;  %p84_p4 = scmp.ne.s32.totalorder %s668_s10, %s664_s9 }
   0x8   : > { %p740_p3 = por %p79_p2, %p78_p1  ;;  %s67_s19 = ssub.s32 %s680_s13, %s817_s16 }
   0x9   : > { %p85_p5 = scmp.eq.s32.totalorder %s479_s15, 0  ;;  %p69_p6 = scmp.eq.s32.totalorder %s67_s19, 0 }
   0xa   : > { %p110_p7 = scmp.eq.s32.totalorder %s479_s15, 1  ;;  %p544_p10 = scmp.lt.s32.totalorder %s684_s14, 2 }
   0xb   : > { %p747_p8 = por %p85_p5, %p84_p4  ;;  %s148_s23 = sand.u32 1, %s672_s11  }
   0xc   : > { %s752_s21 = scalar_select %p69_p6, %s672_s11, %s71_s17  }
   0xd   : > { %p754_p9 = por %p110_p7, %p78_p1  ;;  %s485_s24 = sshll.u32 %s680_s13, 2 }
   0xe   : > { %s484_s25 = sshll.u32 %s148_s23, 6  ;;  %s159_s28 = scalar_lea.hbm %s806_s1, %s485_s24 }
   0xf   : > { %s160_s29 = sshll.u32 %s159_s28, 4  ;;  %s152_s30 = scalar_lea.vmem [#allocation3], %s484_s25  ;;  %s161_s29 = int_to_ptr.hbm [resolvable:$true] %s160_s29 }
  0x10   : > { %s162_s3 = sshll.u32 %s152_s30, 4  ;;  %p541_p11 = pnand %p544_p10, %p740_p3  ;;  %s163_s3 = int_to_ptr.vmem [resolvable:$true] %s162_s3 }
  0x11   : > { %p486_p12 = scmp.ge.s32.totalorder %s684_s14, 1  ;;  %s149_s4 = scalar_lea.sflag [#allocation4], %s148_s23 }
  0x12   : > { %s686_s5 = smov 128   ;;  %s687_s6 = smov 64  }
  0x13   : > { %s688_s7 = smov 4   ;;  %p170_p13 = scmp.lt.s32.totalorder %s684_s14, 3 }
  0x14   : > { %543 = dma.hbm_to_vmem [thread:$0]  (!%p541_p11), %s161_s29, 1024, %s163_s3, %s149_s4, %s686_s5, %s687_s6, %s688_s7  }
  0x15   : > { %p171_p0 = pnand %p486_p12, %p170_p13 }
  0x16   : > { %s769_s8 = sand.u32 (!%p171_p0), 1, %s668_s10  }
  0x17   : > { %174 = sbr.rel (%p171_p0) target bundleno = 224 (0xe0), region = 28  ;;  %s487_s9 = sshll.u32 (!%p171_p0), %s769_s8, 6 }
  0x18   : > { %s177_s15 = scalar_lea.sflag (!%p171_p0), [#allocation4], %s769_s8  ;;  %s180_s17 = scalar_lea.vmem (!%p171_p0), [#allocation3], %s487_s9 }
  0x1c   : > { %659 = dma.done.wait (%p747_p8), %s177_s15, 1024  }
  0x1d   : > { %661 = vsyncadd (%p747_p8), %s177_s15, 4294966272  ;;  %v537_v0 = vld [vmem:[%s180_s17 + $0x38] sm:$0xff]  ;;  %v536_v1 = vld [vmem:[%s180_s17 + $0x30] sm:$0xff]  ;;  %s488_s20 = sshll.u32 %s769_s8, 4  ;;  %s526_s24 = sshll.u32 (%p754_p9), %s676_s12, 3 }
  0x1e   : > { %300 = vmatpush.bf16.msra.mxu0 %v537_v0  ;;  %v535_v2 = vld [vmem:[%s180_s17 + $0x28] sm:$0xff]  ;;  %v534_v3 = vld [vmem:[%s180_s17 + $0x20] sm:$0xff]  ;;  %v533_v4 = vld [vmem:[%s180_s17 + $0x18] sm:$0xff]  ;;  %s208_s23 = scalar_lea.vmem [#allocation5], %s488_s20  ;;  %s346_s27 = scalar_lea.vmem (%p754_p9), %s807_s2, %s526_s24 }
  0x1f   : > { %v532_v5 = vld [vmem:[%s180_s17 + $0x10] sm:$0xff]  ;;  %v531_v6 = vld [vmem:[%s180_s17 + $0x8] sm:$0xff]  ;;  %v530_v7 = vld [vmem:[%s180_s17] sm:$0xff] }
  0x20   : > { %v529_v8 = vld [vmem:[%s805_s0] sm:$0xff] }
  0x22   : > { %301 = vmatpush.bf16.msra.mxu0 %v536_v1 }
  0x26   : > { %302 = vmatpush.bf16.msra.mxu0 %v535_v2 }
  0x2a   : > { %303 = vmatpush.bf16.msra.mxu0 %v534_v3 }
  0x2e   : > { %304 = vmatpush.bf16.msra.mxu0 %v533_v4 }
  0x32   : > { %305 = vmatpush.bf16.msra.mxu0 %v532_v5 }
  0x36   : > { %306 = vmatpush.bf16.msra.mxu0 %v531_v6 }
  0x3a   : > { %307 = vmatpush.bf16.msra.mxu0 %v530_v7 }
  0x3d   : > { %308 = vmatmul.bf16.vlgmr.msra.gmra.mxu0 %v529_v8 }
  0xba   : > { %v309_v9 = vpop.f32.mrf.mxu0 }
  0xbb   : > { %v323_v10 = vsub.f32 0.0, %v309_v9 }
  0xbd   : > { %v325_v11 = vmul.f32 1.442695, %v323_v10 }
  0xbf   : > { %596 = vpow2.f32 %v325_v11 }
  0xc2   : > { %v311_v12 = vpop.f32.mrf.mxu0 }
  0xc3   : > { %v324_v13 = vsub.f32 0.0, %v311_v12 }
  0xc5   : > { %v597_v14 = vpop.eup %596  ;;  %v327_v15 = vmul.f32 1.442695, %v324_v13 }
  0xc6   : > { %v329_v16 = vadd.f32 1.0, %v597_v14 }
  0xc7   : > { %598 = vpow2.f32 %v327_v15 }
  0xc8   : > { %600 = vrcp.f32 %v329_v16 }
  0xcd   : > { %v599_v17 = vpop.eup %598 }
  0xce   : > { %v601_v18 = vpop.eup %600  ;;  %v330_v19 = vadd.f32 1.0, %v599_v17 }
  0xcf   : > { %333 = vst [vmem:[%s208_s23] sm:$0xff] %v601_v18 }
  0xd0   : > { %602 = vrcp.f32 %v330_v19 }
  0xd3   : > { %341 = sbr.rel (!%p754_p9) target bundleno = 224 (0xe0), region = 44 }
  0xd6   : > { %v603_v20 = vpop.eup %602  ;;  %v377_v21 = vld [vmem:[%s208_s23] sm:$0xff] (%p754_p9) }
  0xd7   : > { %334 = vst [vmem:[%s208_s23 + $0x8] sm:$0xff] %v603_v20 }
  0xd8   : > { %378 = vst [vmem:[%s346_s27] sm:$0xff] %v377_v21 }
  0xde   : > { %v379_v22 = vld [vmem:[%s208_s23 + $0x8] sm:$0xff] }
  0xdf   : > { %380 = vst [vmem:[%s346_s27 + $0x10] sm:$0xff] %v379_v22 }
  0xe0 PF: > { %s15_s14 = sadd.s32 1, %s684_s14   ;;  %s811_s9 = smov %s668_s10 }
  0xe1   : > { %p12_p1 = scmp.ge.s32.totalorder %s15_s14, 4   ;;  %s812_s10 = smov %s672_s11 }
  0xe2   : > { %s813_s11 = smov %s752_s21  ;;  %s814_s12 = smov %s680_s13 }
  0xe3   : > { %s815_s13 = smov %s817_s16  ;;  %14 = sbr.rel (!%p12_p1) target bundleno = 4 (0x4), region = 117 }
  0xe8   :  { %396 = vsyncpa [#allocation4], 1 }
  0xe9   :  { %398 = vsyncpa [#allocation4 + $0x1], 1 }

</bundles_post_ra>
